<compile_context>
chip_gen: v7x
topology: tpu7x:2x2x1
jax: 0.10.0
libtpu: 0.0.40
codegen_flags: <defaults>
</compile_context>

<pallas_src>
import functools

import jax
import jax.numpy as jnp
from jax.experimental import pallas as pl
from jax.experimental.pallas import tpu as pltpu

# ---------------------------------------------------------------------------
# Small demo shapes (generic Linear: input_dim -> output_dim).
# ---------------------------------------------------------------------------
BATCH = 256
IN_DIM = 64
OUT_DIM = 128          # lane-dense output (multiple of 128)
BLOCK_B = 64           # batch tile (multiple of 8, divides BATCH)


# ---------------------------------------------------------------------------
# Kernel: one batch tile of the Linear layer.
# ---------------------------------------------------------------------------
def embedding_kernel(x_ref, w_ref, b_ref, o_ref):
    # x_ref: (BLOCK_B, IN_DIM), w_ref: (IN_DIM, OUT_DIM), b_ref: (1, OUT_DIM)
    acc = jnp.dot(x_ref[...], w_ref[...], preferred_element_type=jnp.float32)
    o_ref[...] = (acc + b_ref[...]).astype(o_ref.dtype)


# ---------------------------------------------------------------------------
# Wrapper: batch-gridded pallas_call.
# ---------------------------------------------------------------------------
@functools.partial(jax.jit, static_argnames=("block_b",))
def embedding_forward(x, w, b, *, block_b=BLOCK_B):
    batch, in_dim = x.shape
    out_dim = w.shape[1]

    grid = (pl.cdiv(batch, block_b),)

    cost = pl.CostEstimate(
        flops=2 * batch * in_dim * out_dim,
        transcendentals=0,
        bytes_accessed=4 * (x.size + w.size + b.size + batch * out_dim),
    )

    return pl.pallas_call(
        embedding_kernel,
        out_shape=jax.ShapeDtypeStruct((batch, out_dim), x.dtype),
        grid_spec=pltpu.PrefetchScalarGridSpec(
            num_scalar_prefetch=0,
            grid=grid,
            in_specs=[
                pl.BlockSpec((block_b, in_dim), lambda i: (i, 0)),   # x tile
                pl.BlockSpec((in_dim, out_dim), lambda i: (0, 0)),   # W (replicated)
                pl.BlockSpec((1, out_dim), lambda i: (0, 0)),        # bias (replicated)
            ],
            out_specs=pl.BlockSpec((block_b, out_dim), lambda i: (i, 0)),
        ),
        compiler_params=pltpu.CompilerParams(
            dimension_semantics=("parallel",),
        ),
        cost_estimate=cost,
    )(x, w, b)


# ---------------------------------------------------------------------------
# Deterministic parameter construction (PyTorch nn.Linear default init:
# weight/bias ~ U(-1/sqrt(fan_in), 1/sqrt(fan_in))), weight stored transposed.
# ---------------------------------------------------------------------------
def make_linear_params(key, in_dim, out_dim):
    kw, kb = jax.random.split(key)
    bound = 1.0 / jnp.sqrt(jnp.float32(in_dim))
    w_pt = jax.random.uniform(kw, (out_dim, in_dim), jnp.float32, -bound, bound)
    b = jax.random.uniform(kb, (out_dim,), jnp.float32, -bound, bound)
    return w_pt.T, b.reshape(1, out_dim)   # (in, out), (1, out)


# ---------------------------------------------------------------------------
if __name__ == "__main__":
    root = jax.random.PRNGKey(0)
    k_params, k_x = jax.random.split(root)

    w, b = make_linear_params(k_params, IN_DIM, OUT_DIM)
    x = jax.random.normal(k_x, (BATCH, IN_DIM), jnp.float32)

    out = embedding_forward(x, w, b)
    out = jax.block_until_ready(out)

    # Pure-JAX reference (== PyTorch x @ W_pt.T + b).
    ref = x @ w + b

    assert out.shape == (BATCH, OUT_DIM)
    assert bool(jnp.all(jnp.isfinite(out)))
    assert bool(jnp.allclose(out, ref, rtol=1e-5, atol=1e-5))

    print("KERNEL_OK")
</pallas_src>

<mosaic_0001>
module attributes {stable_mosaic.version = 11 : i64} {
  func.func @embedding_kernel(%arg0: i32, %arg1: memref<64x64xf32, #tpu.memory_space<vmem>>, %arg2: memref<64x128xf32, #tpu.memory_space<vmem>>, %arg3: memref<1x128xf32, #tpu.memory_space<vmem>>, %arg4: memref<64x128xf32, #tpu.memory_space<vmem>>) attributes {dimension_semantics = [#tpu.dimension_semantics<parallel>], iteration_bounds = array<i64: 4>, scalar_prefetch = 0 : i64, scratch_operands = 0 : i64, tpu.core_type = #tpu.core_type<tc>, window_params = [{transform_indices = @transform_0, window_bounds = array<i64: 64, 64>}, {pipeline_mode = #tpu.pipeline_mode<synchronous>, transform_indices = @transform_1, window_bounds = array<i64: 64, 128>}, {pipeline_mode = #tpu.pipeline_mode<synchronous>, transform_indices = @transform_2, window_bounds = array<i64: 1, 128>}, {transform_indices = @transform_3, window_bounds = array<i64: 64, 128>}]} {
    %c0 = arith.constant 0 : index
    %c0_0 = arith.constant 0 : index
    %0 = vector.load %arg1[%c0, %c0_0] : memref<64x64xf32, #tpu.memory_space<vmem>>, vector<64x64xf32>
    %c0_1 = arith.constant 0 : index
    %c0_2 = arith.constant 0 : index
    %1 = vector.load %arg2[%c0_1, %c0_2] : memref<64x128xf32, #tpu.memory_space<vmem>>, vector<64x128xf32>
    %cst = arith.constant dense<0.000000e+00> : vector<64x128xf32>
    %2 = tpu.matmul %0, %1, %cst {dimension_numbers = #tpu.dot_dimension_numbers<[1], [0], [0], [1], [0, 0, 1, 1], [], []>} : vector<64x64xf32>, vector<64x128xf32>, vector<64x128xf32> -> vector<64x128xf32>
    %c0_3 = arith.constant 0 : index
    %c0_4 = arith.constant 0 : index
    %3 = vector.load %arg3[%c0_3, %c0_4] : memref<1x128xf32, #tpu.memory_space<vmem>>, vector<1x128xf32>
    %4 = vector.broadcast %3 : vector<1x128xf32> to vector<64x128xf32>
    %5 = arith.addf %2, %4 : vector<64x128xf32>
    %c0_5 = arith.constant 0 : index
    %c0_6 = arith.constant 0 : index
    %6 = vector.load %arg4[%c0_5, %c0_6] : memref<64x128xf32, #tpu.memory_space<vmem>>, vector<64x128xf32>
    tpu.vector_store %arg4[%c0_5, %c0_6], %5 {strides = array<i32>} : memref<64x128xf32, #tpu.memory_space<vmem>>, vector<64x128xf32>,
    return
  }
  func.func @transform_0(%arg0: i32) -> (i32, i32) {
    %c0_i32 = arith.constant 0 : i32
    %c0_i32_0 = arith.constant 0 : i32
    return %arg0, %c0_i32 : i32, i32
  }
  func.func @transform_1(%arg0: i32) -> (i32, i32) {
    %c0_i32 = arith.constant 0 : i32
    %c0_i32_0 = arith.constant 0 : i32
    %c0_i32_1 = arith.constant 0 : i32
    return %c0_i32, %c0_i32_0 : i32, i32
  }
  func.func @transform_2(%arg0: i32) -> (i32, i32) {
    %c0_i32 = arith.constant 0 : i32
    %c0_i32_0 = arith.constant 0 : i32
    %c0_i32_1 = arith.constant 0 : i32
    return %c0_i32, %c0_i32_0 : i32, i32
  }
  func.func @transform_3(%arg0: i32) -> (i32, i32) {
    %c0_i32 = arith.constant 0 : i32
    %c0_i32_0 = arith.constant 0 : i32
    return %arg0, %c0_i32 : i32, i32
  }
}

</mosaic_0001>

<bundles_post_ra>
// kernel: embedding_forward.1
= control target key start
LH: loop header
LB: loop body
LE: loop exit
PB: predicated region body
PF: predicated region fallthrough
CT: control target
= control target key end

     0   :  { %8 = vsyncpa [#allocation3], 0  ;;  %s768_s0 = inlined_call_operand.vmem [shape: f32[256,64], index: 0, kind: input, shape index: {}]   ;;  %s769_s1 = inlined_call_operand.vmem [shape: f32[64,128], index: 1, kind: input, shape index: {}]   ;;  %s770_s2 = inlined_call_operand.vmem [shape: f32[1,128], index: 2, kind: input, shape index: {}]   ;;  %s771_s3 = inlined_call_operand.hbm [shape: f32[256,128], index: 3, kind: output, shape index: {}]  }
   0x1   :  { %10 = vsyncpa [#allocation3 + $0x1], 0  ;;  %s627_s12 = smov 0   ;;  %s629_s13 = smov 0  }
   0x2   :  { %s631_s14 = smov 0   ;;  %s633_s15 = smov 0  }
   0x3 LB: > { %s648_s16 = sadd.s32 4294967295, %s602_s15   ;;  %s409_s17 = sadd.s32 4294967294, %s602_s15   ;;  %s602_s15 = sphi %s633_s15, %s777_s15   ;;  %s598_s14 = sphi %s631_s14, %s776_s14   ;;  %s594_s13 = sphi %s629_s13, %s775_s13   ;;  %s590_s12 = sphi %s627_s12, %s774_s12  }
   0x4   : > { %s652_s18 = sadd.s32 1, %s602_s15   ;;  %s91_s19 = sadd.s32 1, %s598_s14 }
   0x5   : > { %s88_s20 = ssub.s32 %s602_s15, %s652_s18  ;;  %p101_p0 = scmp.ne.s32.totalorder %s598_s14, %s594_s13 }
   0x6   : > { %p89_p1 = scmp.eq.s32.totalorder %s88_s20, 0  ;;  %p102_p2 = scmp.eq.s32.totalorder %s648_s16, 3 }
   0x7   : > { %p107_p3 = scmp.ne.s32.totalorder %s594_s13, %s590_s12  ;;  %p108_p4 = scmp.eq.s32.totalorder %s409_s17, 3 }
   0x8   : > { %s663_s21 = scalar_select %p89_p1, %s598_s14, %s91_s19  }
   0x9   : > { %p665_p5 = por %p102_p2, %p101_p0  ;;  %p669_p6 = por %p108_p4, %p107_p3 }
   0xa   : > { %p412_p7 = scmp.ge.s32.totalorder %s602_s15, 1  ;;  %p141_p8 = scmp.lt.s32.totalorder %s602_s15, 5 }
   0xc   : > { %p142_p9 = pnand %p412_p7, %p141_p8 }
   0xd   : > { %v180_v0 = vld [vmem:[%s769_s1] sm:$0xff] (!%p142_p9)  ;;  %v181_v1 = vld [vmem:[%s769_s1 + $0x8] sm:$0xff] (!%p142_p9)  ;;  %v182_v2 = vld [vmem:[%s769_s1 + $0x10] sm:$0xff] (!%p142_p9)  ;;  %s414_s30 = sshll.u32 (!%p142_p9), %s648_s16, 3  ;;  %vm195_vm0 = vcmask (!%p142_p9), 523264   ;;  %s162_s27 = sand.u32 (!%p142_p9), 1, %s594_s13  }
   0xe   : > { %145 = sbr.rel (%p142_p9) target bundleno = 267 (0x10b), region = 32  ;;  %v475_v3 = vpack.c.bf16 (!%p142_p9), %v181_v1, %v180_v0  ;;  %v183_v4 = vld [vmem:[%s769_s1 + $0x18] sm:$0xff] (!%p142_p9)  ;;  %p166_p10 = scmp.lt.s32.totalorder (!%p142_p9), %s414_s30, 31  ;;  %v184_v6 = vld [vmem:[%s769_s1 + $0x20] sm:$0xff] (!%p142_p9)  ;;  %v185_v7 = vld [vmem:[%s769_s1 + $0x28] sm:$0xff] (!%p142_p9) }
   0xf   : > { %v479_v5 = vpack.c.bf16 (!%p142_p9), %v183_v4, %v182_v2  ;;  %v483_v8 = vpack.c.bf16 (!%p142_p9), %v185_v7, %v184_v6  ;;  %v186_v9 = vld [vmem:[%s769_s1 + $0x30] sm:$0xff] (!%p142_p9)  ;;  %v187_v10 = vld [vmem:[%s769_s1 + $0x38] sm:$0xff] (!%p142_p9)  ;;  %s413_s28 = sshll.u32 (!%p142_p9), %s162_s27, 6  ;;  %v416_v20 = vld [vmem:[%s770_s2] ss:$0 sm:$0xff] (!%p142_p9)  ;;  %s430_s4 = sshll.u32 (!%p142_p9), %s648_s16, 10 }
  0x10   : > { %476 = vmatprep.subr.bf16.mxu0 (!%p142_p9), %v475_v3  ;;  %491 = vmatprep.subr.bf16.mxu1 (!%p142_p9), %v475_v3  ;;  %v487_v13 = vpack.c.bf16 (!%p142_p9), %v187_v10, %v186_v9  ;;  %s164_s5 = scalar_lea.vmem (!%p142_p9), [#allocation2], %s413_s28  ;;  %s721_s9 = scalar_lea.hbm (!%p142_p9), %s771_s3, %s430_s4 }
  0x11   : > { %478 = vmatpush3.bf16.msra.mxu0 (!%p142_p9), %v475_v3  ;;  %495 = vmatpush3.bf16.msra.mxu1 (!%p142_p9), %v475_v3  ;;  %s347_s6 = sshll.u32 (!%p142_p9), %s164_s5, 4  ;;  %s727_s16 = scalar_lea.sflag (!%p142_p9), [#allocation3], %s162_s27  ;;  %s723_s6 = int_to_ptr.vmem [resolvable:$true] %s347_s6 }
  0x12   : > { %480 = vmatprep.subr.bf16.mxu0 (!%p142_p9), %v479_v5  ;;  %492 = vmatprep.subr.bf16.mxu1 (!%p142_p9), %v479_v5  ;;  %s604_s11 = smov (!%p142_p9), [#allocation2]  }
  0x13   : > { %s544_s17 = sshll.u32 (!%p142_p9), %s604_s11, 4  ;;  %s545_s17 = int_to_ptr.vmem [resolvable:$false] %s544_s17 }
  0x14   : > { %s546_s19 = scalar_lea.vmem (!%p142_p9), %s545_s17, 2048  ;;  %p547_p0 = scmp.lt.s32.totalorder (!%p142_p9), %s723_s6, %s545_s17 }
  0x15   : > { %s779_s30 = smov (!%p166_p10, %s414_s30), 31  ;;  %482 = vmatpush3.bf16.msra.mxu0 %v479_v5  ;;  %496 = vmatpush3.bf16.msra.mxu1 %v479_v5 }
  0x16   : > { %s415_s10 = sshll.u32 %s779_s30, 3  ;;  %484 = vmatprep.subr.bf16.mxu0 %v483_v8  ;;  %493 = vmatprep.subr.bf16.mxu1 %v483_v8 }
  0x17   : > { %s169_s26 = scalar_lea.vmem %s768_s0, %s415_s10  ;;  %s540_s10 = scalar_lea.vmem %s723_s6, 1024 }
  0x18   : > { %v172_v11 = vld [vmem:[%s169_s26] sm:$0xff]  ;;  %v173_v14 = vld [vmem:[%s169_s26 + $0x8] sm:$0xff]  ;;  %v174_v16 = vld [vmem:[%s169_s26 + $0x10] sm:$0xff]  ;;  %p541_p11 = scmp.ne.s32.totalorder %s723_s6, %s540_s10  ;;  %p548_p1 = scmp.lt.s32.totalorder %s546_s19, %s540_s10 }
  0x19   : > { %v176_v12 = vld [vmem:[%s169_s26 + $0x20] sm:$0xff]  ;;  %463 = vmatprep.mubr.msk.f32.mxu0 %vm195_vm0, %v172_v11  ;;  %486 = vmatpush3.bf16.msra.mxu0 %v483_v8  ;;  %v177_v15 = vld [vmem:[%s169_s26 + $0x28] sm:$0xff]  ;;  %v178_v17 = vld [vmem:[%s169_s26 + $0x30] sm:$0xff] }
  0x1a   : > { %469 = vmatprep.mubr.msk.f32.mxu1 %vm195_vm0, %v176_v12  ;;  %497 = vmatpush3.bf16.msra.mxu1 %v483_v8  ;;  %v175_v18 = vld [vmem:[%s169_s26 + $0x18] sm:$0xff]  ;;  %p542_p12 = pnand %p541_p11, %p665_p5  ;;  %p549_p2 = por %p548_p1, %p547_p0 }
  0x1b   : > { %488 = vmatprep.subr.bf16.mxu0 %v487_v13  ;;  %494 = vmatprep.subr.bf16.mxu1 %v487_v13  ;;  %v179_v19 = vld [vmem:[%s169_s26 + $0x38] sm:$0xff] }
  0x1c   : > { %p543_p13 = pneg %p542_p12 }
  0x1d   : > { %490 = vmatpush3.bf16.msra.mxu0 %v487_v13 }
  0x1e   : > { %498 = vmatpush3.bf16.msra.mxu1 %v487_v13  ;;  %p550_p3 = pnand %p549_p2, %p543_p13 }
  0x20   : > { %464 = vmatmul.mubr.msk.f32.vlgmr.msra.gmra.mrb[0].mxu0 %vm195_vm0, %v173_v14 }
  0x21   : > { %470 = vmatmul.mubr.msk.f32.vlgmr.msra.gmra.mrb[0].mxu1 %vm195_vm0, %v177_v15  ;;  %466 = vmatprep.mubr.msk.f32.mxu0 %vm195_vm0, %v174_v16 }
  0x22   : > { %472 = vmatprep.mubr.msk.f32.mxu1 %vm195_vm0, %v178_v17 }
  0x24   : > { %467 = vmatmul.mubr.msk.f32.gmra.mrb[2].mxu0 %vm195_vm0, %v175_v18 }
  0x25   : > { %473 = vmatmul.mubr.msk.f32.gmra.mrb[2].mxu1 %vm195_vm0, %v179_v19 }
  0xf3   : > { %v465_v21 = vpop.f32.mrb[0].mxu0 }
  0xf4   : > { %v471_v22 = vpop.f32.mrb[0].mxu1  ;;  %v292_v23 = vadd.f32 %v465_v21, %v416_v20  ;;  %v286_v25 = vpop.f32.mrb[1].mxu0 }
  0xf5   : > { %v312_v24 = vadd.f32 %v471_v22, %v416_v20  ;;  %v306_v26 = vpop.f32.mrb[1].mxu1  ;;  %v287_v27 = vadd.f32 %v416_v20, %v286_v25 }
  0xf6   : > { %v307_v28 = vadd.f32 %v416_v20, %v306_v26  ;;  %326 = vst [vmem:[%s164_s5 + $0x8] sm:$0xff] %v292_v23 }
  0xf7   : > { %330 = vst [vmem:[%s164_s5 + $0x28] sm:$0xff] %v312_v24  ;;  %325 = vst [vmem:[%s164_s5] sm:$0xff] %v287_v27  ;;  %v468_v29 = vpop.f32.mrb[2].mxu0 }
  0xf8   : > { %329 = vst [vmem:[%s164_s5 + $0x20] sm:$0xff] %v307_v28  ;;  %v474_v30 = vpop.f32.mrb[2].mxu1  ;;  %v302_v31 = vadd.f32 %v468_v29, %v416_v20  ;;  %v296_v33 = vpop.f32.mrb[3].mxu0 }
  0xf9   : > { %v322_v32 = vadd.f32 %v474_v30, %v416_v20  ;;  %v316_v34 = vpop.f32.mrb[3].mxu1  ;;  %v297_v35 = vadd.f32 %v416_v20, %v296_v33 }
  0xfa   : > { %v317_v36 = vadd.f32 %v416_v20, %v316_v34  ;;  %328 = vst [vmem:[%s164_s5 + $0x18] sm:$0xff] %v302_v31 }
  0xfb   : > { %332 = vst [vmem:[%s164_s5 + $0x38] sm:$0xff] %v322_v32  ;;  %327 = vst [vmem:[%s164_s5 + $0x10] sm:$0xff] %v297_v35 }
  0xfc   : > { %331 = vst [vmem:[%s164_s5 + $0x30] sm:$0xff] %v317_v36 }
  0xfd   : > { %553 = shalt.err (!%p550_p3)
}
  0xfe   : > { %s554_s20 = scalar_lea.hbm %s721_s9, 1024  ;;  %s558_s26 = scalar_lea.hbm %s771_s3, 4096 }
  0xff   : > { %p555_p4 = scmp.ne.s32.totalorder %s721_s9, %s554_s20  ;;  %p559_p9 = scmp.lt.u32.totalorder %s721_s9, %s771_s3 }
 0x100   : > { %p560_p10 = scmp.lt.u32.totalorder %s558_s26, %s554_s20  ;;  %p562_p12 = scmp.lt.u32.totalorder %s554_s20, %s721_s9 }
 0x101   : > { %p556_p7 = pnand %p555_p4, %p665_p5 }
 0x102   : > { %p561_p11 = por %p560_p10, %p559_p9 }
 0x103   : > { %p557_p8 = pneg %p556_p7 }
 0x104   : > { %p563_p13 = por %p562_p12, %p561_p11 }
 0x106   : > { %p564_p0 = pnand %p563_p13, %p557_p8 }
 0x108   : > { %567 = shalt.err (!%p564_p0)
}
 0x109   : > { %s605_s29 = smov 128   ;;  %s606_s30 = smov 8  }
 0x10a   : > { %499 = dma.vmem_to_hbm [thread:$0]  (%p665_p5), %s723_s6, 1024, %s721_s9, %s727_s16, %s605_s29, %s605_s29, %s606_s30  }
 0x10b PF: > { %p505_p1 = scmp.ge.s32.totalorder %s602_s15, 2  ;;  %s362_s4 = sand.u32 1, %s590_s12  }
 0x10c   : > { %s363_s5 = scalar_lea.sflag [#allocation3], %s362_s4 }
 0x10d   : > { %p502_p2 = pnand %p505_p1, %p669_p6 }
 0x10f   : > { %585 = dma.done.wait (!%p502_p2), %s363_s5, 1024  }
 0x110   : > { %587 = vsyncadd (!%p502_p2), %s363_s5, 4294966272  ;;  %p13_p3 = scmp.ge.s32.totalorder %s652_s18, 6   ;;  %s774_s12 = smov %s594_s13 }
 0x111   : > { %s775_s13 = smov %s598_s14  ;;  %s776_s14 = smov %s663_s21 }
 0x112   : > { %s777_s15 = smov %s652_s18  ;;  %15 = sbr.rel (!%p13_p3) target bundleno = 3 (0x3), region = 67 }
 0x119   :  { %368 = vsyncpa [#allocation3], 1 }
 0x11a   :  { %370 = vsyncpa [#allocation3 + $0x1], 1 }

</bundles_post_ra>
